<compile_context>
chip_gen: v7x
topology: tpu7x:2x2x1
jax: 0.10.0
libtpu: 0.0.40
codegen_flags: <defaults>
</compile_context>

<pallas_src>
import functools

import jax
import jax.numpy as jnp
from jax.experimental import pallas as pl
from jax.experimental.pallas import tpu as pltpu

_MIB = 1024 * 1024


# ----------------------------------------------------------------------------
# Kernel: one (bh-tile, q-tile) step
# ----------------------------------------------------------------------------
def _sdpa_kernel(q_ref, k_ref, v_ref, w_ref, a_ref, *,
                 inv_scale, exp_dtype, approx_recip):
    # q_ref: (bh_t, tq, D)   k_ref/v_ref: (bh_t, S, D)
    # w_ref: (bh_t, tq, D)   a_ref:       (bh_t, tq, S)
    q = q_ref[...] * inv_scale          # fold 1/scaled into Q (O(tq*D) muls)
    k = k_ref[...]
    v = v_ref[...]

    # energy = Q @ K^T, batched over the bh-tile axis, f32 accumulation.
    s = jnp.einsum("bqd,bkd->bqk", q, k,
                   preferred_element_type=jnp.float32)      # (bh_t, tq, S)

    # numerically-stable softmax over the key axis
    m = jnp.max(s, axis=-1, keepdims=True)
    p = jnp.exp((s - m).astype(exp_dtype))
    l = jnp.sum(p, axis=-1, keepdims=True, dtype=jnp.float32)
    inv_l = pl.reciprocal(l, approx=approx_recip)            # EUP slot

    # Stage the normalized attention through the output buffer and read it
    # back for the PV matmul: one fewer live (tq, S) temporary, and the two
    # returned tensors are mutually consistent.
    a_ref[...] = (p * inv_l.astype(p.dtype)).astype(a_ref.dtype)
    attn = a_ref[...].astype(v.dtype)

    # dropout=0 in the reference module -> identity.
    w_ref[...] = jnp.einsum("bqk,bkd->bqd", attn, v,
                            preferred_element_type=jnp.float32
                            ).astype(w_ref.dtype)
    # TODO(synk): mask path (energy.masked_fill(mask == 0, -epsilon)) and
    #             dropout > 0 are not implemented; only the module's default
    #             mask=None / dropout=0 forward is reproduced.


# ----------------------------------------------------------------------------
# Tiling helpers
# ----------------------------------------------------------------------------
def _vmem_limit_bytes():
    """Chip-aware scoped-VMEM request with headroom for Mosaic scratch."""
    try:
        cap = int(pltpu.get_tpu_info().vmem_capacity_bytes)
    except Exception:
        cap = 64 * _MIB   # assume the smallest (v7x per-core) VMEM
    # ~48 MiB on 64 MiB parts (v7x), ~96 MiB on 128 MiB parts (v5e/v6e).
    return max(32 * _MIB, min(cap - 16 * _MIB, (cap * 3) // 4, 100 * _MIB))


def _choose_tiles(BH, S, D, csz, asz, wsz, vmem_limit):
    """Pick (bh_tile, tq, kv_buffers) under a VMEM budget."""
    budget = vmem_limit - 4 * _MIB    # margin for Mosaic internal scratch

    # Batch several (batch*head) rows per step when the per-head problem is
    # tiny, so a grid step is not dominated by the ~0.35us pipeline overhead.
    if S >= 128:
        bh_tile = 1
    else:
        target = max(1, 512 // max(S, 1))
        bh_tile = 1
        for c in range(min(target, BH), 0, -1):
            if BH % c == 0:
                bh_tile = c
                break

    # Candidate q-row tiles: sublane-friendly divisors of S, largest first.
    cands = [t for t in range(512, 7, -8) if t <= S and S % t == 0]
    if not cands:
        cands = [S]

    def fits(tq, kv_bufs):
        blocks = (2 * bh_tile * tq * D * csz              # q (double buffered)
                  + 2 * kv_bufs * bh_tile * S * D * csz   # k and v
                  + 2 * bh_tile * tq * D * wsz            # weighted out
                  + 2 * bh_tile * tq * S * asz)           # attention out
        temps = 3 * bh_tile * tq * S * 4                  # live f32 score temps
        return blocks + temps <= budget

    for kv_bufs in (2, 1):
        for tq in cands:
            if fits(tq, kv_bufs):
                return bh_tile, tq, kv_bufs
    return bh_tile, cands[-1], 1      # best effort


# ----------------------------------------------------------------------------
# Wrapper
# ----------------------------------------------------------------------------
def scaled_dot_product_attention(query, key, value, *, scaled=1.0,
                                 compute_dtype=jnp.bfloat16,
                                 attn_dtype=None, out_dtype=None):
    """query/key/value: (..., S, D) ->
       (weighted (..., S, D) [out_dtype], attention (..., S, S) [attn_dtype]).

    compute_dtype: MXU operand dtype (bf16 default: native MXU rate, half DMA).
    attn_dtype:    dtype of the returned attention matrix (default =
                   compute_dtype; bf16 halves the dominant S x S writeback).
    out_dtype:     dtype of the weighted output (default: query.dtype).
    """
    assert query.shape == key.shape == value.shape
    *lead, S, D = query.shape
    BH = 1
    for d in lead:
        BH *= int(d)
    BH = max(BH, 1)

    compute_dtype = jnp.dtype(compute_dtype)
    attn_dtype = jnp.dtype(attn_dtype) if attn_dtype is not None else compute_dtype
    out_dtype = jnp.dtype(out_dtype) if out_dtype is not None else query.dtype

    q3 = query.reshape(BH, S, D).astype(compute_dtype)
    k3 = key.reshape(BH, S, D).astype(compute_dtype)
    v3 = value.reshape(BH, S, D).astype(compute_dtype)

    vmem_limit = _vmem_limit_bytes()
    bh_tile, tq, kv_bufs = _choose_tiles(
        BH, S, D, compute_dtype.itemsize, attn_dtype.itemsize,
        out_dtype.itemsize, vmem_limit)

    low_precision = compute_dtype == jnp.bfloat16
    # exp count (tq*S on the single EUP) dominates for small D; bf16 exp
    # roughly doubles EUP throughput on v6e/v7x.
    exp_dtype = jnp.bfloat16 if (low_precision and D <= 128) else jnp.float32

    kern = functools.partial(
        _sdpa_kernel,
        inv_scale=1.0 / float(scaled),
        exp_dtype=exp_dtype,
        approx_recip=bool(low_precision),
    )

    q_spec = pl.BlockSpec((bh_tile, tq, D), lambda b, qi: (b, qi, 0))
    kv_kwargs = {}
    if kv_bufs != 2:  # K/V index only changes per bh; single-buffer if VMEM-tight
        kv_kwargs["pipeline_mode"] = pl.Buffered(kv_bufs)
    kv_spec = pl.BlockSpec((bh_tile, S, D), lambda b, qi: (b, 0, 0), **kv_kwargs)
    w_spec = pl.BlockSpec((bh_tile, tq, D), lambda b, qi: (b, qi, 0))
    a_spec = pl.BlockSpec((bh_tile, tq, S), lambda b, qi: (b, qi, 0))

    weighted, attn = pl.pallas_call(
        kern,
        out_shape=(jax.ShapeDtypeStruct((BH, S, D), out_dtype),
                   jax.ShapeDtypeStruct((BH, S, S), attn_dtype)),
        grid_spec=pltpu.PrefetchScalarGridSpec(
            num_scalar_prefetch=0,
            grid=(BH // bh_tile, S // tq),
            in_specs=[q_spec, kv_spec, kv_spec],
            out_specs=[w_spec, a_spec],
        ),
        compiler_params=pltpu.CompilerParams(
            # bh axis parallel (megacore shards heads; each core keeps its own
            # K/V resident across its q tiles); q-tile axis arbitrary.
            dimension_semantics=("parallel", "arbitrary"),
            vmem_limit_bytes=int(vmem_limit)),
    )(q3, k3, v3)

    return weighted.reshape(*lead, S, D), attn.reshape(*lead, S, S)


# pure-JAX reference for verification
def reference_sdpa(query, key, value, *, scaled=1.0):
    energy = jnp.matmul(query, jnp.swapaxes(key, -1, -2)) / scaled
    attn = jax.nn.softmax(energy, axis=-1)
    weighted = jnp.matmul(attn, value)
    return weighted, attn


if __name__ == "__main__":
    # small shapes consistent with the module: batch=2, heads=4, seq=8, hidden=32
    B, H, S, D = 2, 4, 8, 32
    scaled = float(D) ** 0.5

    key0 = jax.random.PRNGKey(0)
    kq, kk, kv = jax.random.split(key0, 3)
    q = jax.random.normal(kq, (B, H, S, D), jnp.float32)
    k = jax.random.normal(kk, (B, H, S, D), jnp.float32)
    v = jax.random.normal(kv, (B, H, S, D), jnp.float32)

    ref_w, ref_a = reference_sdpa(q, k, v, scaled=scaled)

    # default fast path: bf16 MXU operands + bf16 attention writeback
    w_bf16, a_bf16 = scaled_dot_product_attention(q, k, v, scaled=scaled)
    w_bf16, a_bf16 = jax.block_until_ready((w_bf16, a_bf16))
    assert w_bf16.shape == (B, H, S, D) and w_bf16.dtype == jnp.float32
    assert a_bf16.shape == (B, H, S, S) and a_bf16.dtype == jnp.bfloat16
    assert jnp.allclose(w_bf16, ref_w, atol=5e-2, rtol=5e-2), \
        "weighted (bf16 path) mismatch"
    assert jnp.allclose(a_bf16.astype(jnp.float32), ref_a, atol=5e-2, rtol=5e-2), \
        "attention (bf16 path) mismatch"

    # full-precision path: tight check against the reference
    w_f32, a_f32 = scaled_dot_product_attention(
        q, k, v, scaled=scaled, compute_dtype=jnp.float32)
    w_f32, a_f32 = jax.block_until_ready((w_f32, a_f32))
    assert jnp.allclose(w_f32, ref_w, atol=1e-4, rtol=1e-4), \
        "weighted (f32 path) mismatch"
    assert jnp.allclose(a_f32, ref_a, atol=1e-4, rtol=1e-4), \
        "attention (f32 path) mismatch"

    print("KERNEL_OK")
</pallas_src>

<mosaic_0001>
module attributes {stable_mosaic.version = 11 : i64} {
  func.func @_sdpa_kernel(%arg0: i32, %arg1: i32, %arg2: memref<8x8x32xbf16, #tpu.memory_space<vmem>>, %arg3: memref<8x8x32xbf16, #tpu.memory_space<vmem>>, %arg4: memref<8x8x32xbf16, #tpu.memory_space<vmem>>, %arg5: memref<8x8x32xf32, #tpu.memory_space<vmem>>, %arg6: memref<8x8x8xbf16, #tpu.memory_space<vmem>>) attributes {dimension_semantics = [#tpu.dimension_semantics<parallel>, #tpu.dimension_semantics<arbitrary>], iteration_bounds = array<i64: 1, 1>, scalar_prefetch = 0 : i64, scratch_operands = 0 : i64, tpu.core_type = #tpu.core_type<tc>, window_params = [{transform_indices = @transform_0, window_bounds = array<i64: 8, 8, 32>}, {transform_indices = @transform_1, window_bounds = array<i64: 8, 8, 32>}, {transform_indices = @transform_2, window_bounds = array<i64: 8, 8, 32>}, {transform_indices = @transform_3, window_bounds = array<i64: 8, 8, 32>}, {transform_indices = @transform_4, window_bounds = array<i64: 8, 8, 8>}]} {
    %c0 = arith.constant 0 : index
    %c0_0 = arith.constant 0 : index
    %c0_1 = arith.constant 0 : index
    %0 = vector.load %arg2[%c0, %c0_0, %c0_1] : memref<8x8x32xbf16, #tpu.memory_space<vmem>>, vector<8x8x32xbf16>
    %cst = arith.constant 1.767580e-01 : bf16
    %1 = vector.broadcast %cst : bf16 to vector<8x8x32xbf16>
    %2 = arith.mulf %0, %1 : vector<8x8x32xbf16>
    %c0_2 = arith.constant 0 : index
    %c0_3 = arith.constant 0 : index
    %c0_4 = arith.constant 0 : index
    %3 = vector.load %arg3[%c0_2, %c0_3, %c0_4] : memref<8x8x32xbf16, #tpu.memory_space<vmem>>, vector<8x8x32xbf16>
    %c0_5 = arith.constant 0 : index
    %c0_6 = arith.constant 0 : index
    %c0_7 = arith.constant 0 : index
    %4 = vector.load %arg4[%c0_5, %c0_6, %c0_7] : memref<8x8x32xbf16, #tpu.memory_space<vmem>>, vector<8x8x32xbf16>
    "tpu.trace_start"() <{level = 10 : i32, message = "bqd,bkd->bqk"}> : () -> ()
    %cst_8 = arith.constant dense<0.000000e+00> : vector<8x8x8xf32>
    %5 = tpu.matmul %2, %3, %cst_8 {dimension_numbers = #tpu.dot_dimension_numbers<[2], [2], [1], [1], [0, 0, 0, 1, 1, 1], [0], [0]>} : vector<8x8x32xbf16>, vector<8x8x32xbf16>, vector<8x8x8xf32> -> vector<8x8x8xf32>
    "tpu.trace_stop"() : () -> ()
    %cst_9 = arith.constant dense<0xFF800000> : vector<8x8xf32>
    %6 = vector.multi_reduction <maximumf>, %5, %cst_9 [2] : vector<8x8x8xf32> to vector<8x8xf32>
    %7 = vector.shape_cast %6 : vector<8x8xf32> to vector<8x8x1xf32>
    %8 = vector.broadcast %7 : vector<8x8x1xf32> to vector<8x8x8xf32>
    %9 = arith.subf %5, %8 : vector<8x8x8xf32>
    %10 = arith.truncf %9 : vector<8x8x8xf32> to vector<8x8x8xbf16>
    %11 = math.exp %10 : vector<8x8x8xbf16>
    %12 = arith.extf %11 : vector<8x8x8xbf16> to vector<8x8x8xf32>
    %cst_10 = arith.constant dense<0.000000e+00> : vector<8x8xf32>
    %13 = vector.multi_reduction <add>, %12, %cst_10 [2] : vector<8x8x8xf32> to vector<8x8xf32>
    %14 = vector.shape_cast %13 : vector<8x8xf32> to vector<8x8x1xf32>
    %15 = tpu.reciprocal %14 {approx = true} : vector<8x8x1xf32> -> vector<8x8x1xf32>
    %16 = arith.truncf %15 : vector<8x8x1xf32> to vector<8x8x1xbf16>
    %17 = vector.broadcast %16 : vector<8x8x1xbf16> to vector<8x8x8xbf16>
    %18 = arith.mulf %11, %17 : vector<8x8x8xbf16>
    %c0_11 = arith.constant 0 : index
    %c0_12 = arith.constant 0 : index
    %c0_13 = arith.constant 0 : index
    %19 = vector.load %arg6[%c0_11, %c0_12, %c0_13] : memref<8x8x8xbf16, #tpu.memory_space<vmem>>, vector<8x8x8xbf16>
    tpu.vector_store %arg6[%c0_11, %c0_12, %c0_13], %18 {strides = array<i32>} : memref<8x8x8xbf16, #tpu.memory_space<vmem>>, vector<8x8x8xbf16>,
    %c0_14 = arith.constant 0 : index
    %c0_15 = arith.constant 0 : index
    %c0_16 = arith.constant 0 : index
    %20 = vector.load %arg6[%c0_14, %c0_15, %c0_16] : memref<8x8x8xbf16, #tpu.memory_space<vmem>>, vector<8x8x8xbf16>
    "tpu.trace_start"() <{level = 10 : i32, message = "bqk,bkd->bqd"}> : () -> ()
    %cst_17 = arith.constant dense<0.000000e+00> : vector<8x8x32xf32>
    %21 = tpu.matmul %20, %4, %cst_17 {dimension_numbers = #tpu.dot_dimension_numbers<[2], [1], [1], [2], [0, 0, 0, 1, 1, 2], [0], [0]>} : vector<8x8x8xbf16>, vector<8x8x32xbf16>, vector<8x8x32xf32> -> vector<8x8x32xf32>
    "tpu.trace_stop"() : () -> ()
    %c0_18 = arith.constant 0 : index
    %c0_19 = arith.constant 0 : index
    %c0_20 = arith.constant 0 : index
    %22 = vector.load %arg5[%c0_18, %c0_19, %c0_20] : memref<8x8x32xf32, #tpu.memory_space<vmem>>, vector<8x8x32xf32>
    tpu.vector_store %arg5[%c0_18, %c0_19, %c0_20], %21 {strides = array<i32>} : memref<8x8x32xf32, #tpu.memory_space<vmem>>, vector<8x8x32xf32>,
    return
  }
  func.func @transform_0(%arg0: i32, %arg1: i32) -> (i32, i32, i32) {
    %c0_i32 = arith.constant 0 : i32
    %c0_i32_0 = arith.constant 0 : i32
    return %arg0, %arg1, %c0_i32 : i32, i32, i32
  }
  func.func @transform_1(%arg0: i32, %arg1: i32) -> (i32, i32, i32) {
    %c0_i32 = arith.constant 0 : i32
    %c0_i32_0 = arith.constant 0 : i32
    %c0_i32_1 = arith.constant 0 : i32
    return %arg0, %c0_i32, %c0_i32_0 : i32, i32, i32
  }
  func.func @transform_2(%arg0: i32, %arg1: i32) -> (i32, i32, i32) {
    %c0_i32 = arith.constant 0 : i32
    %c0_i32_0 = arith.constant 0 : i32
    %c0_i32_1 = arith.constant 0 : i32
    return %arg0, %c0_i32, %c0_i32_0 : i32, i32, i32
  }
  func.func @transform_3(%arg0: i32, %arg1: i32) -> (i32, i32, i32) {
    %c0_i32 = arith.constant 0 : i32
    %c0_i32_0 = arith.constant 0 : i32
    return %arg0, %arg1, %c0_i32 : i32, i32, i32
  }
  func.func @transform_4(%arg0: i32, %arg1: i32) -> (i32, i32, i32) {
    %c0_i32 = arith.constant 0 : i32
    %c0_i32_0 = arith.constant 0 : i32
    return %arg0, %arg1, %c0_i32 : i32, i32, i32
  }
}

</mosaic_0001>

<bundles_post_ra>
// kernel: tpu_custom_call.1
= control target key start
LH: loop header
LB: loop body
LE: loop exit
PB: predicated region body
PF: predicated region fallthrough
CT: control target
= control target key end

     0   :  { %10 = vsyncpa [#allocation3], 0  ;;  %s1575_s0 = inlined_call_operand.hbm [shape: bf16[8,8,32], index: 0, kind: input, shape index: {}]   ;;  %s1576_s1 = inlined_call_operand.hbm [shape: bf16[8,8,32], index: 1, kind: input, shape index: {}]   ;;  %s1577_s2 = inlined_call_operand.hbm [shape: bf16[8,8,32], index: 2, kind: input, shape index: {}]   ;;  %s1578_s3 = inlined_call_operand.hbm [shape: f32[8,8,32], index: 3, kind: output, shape index: {0}]   ;;  %s1579_s4 = inlined_call_operand.hbm [shape: bf16[8,8,8], index: 4, kind: output, shape index: {1}]  }
   0x1   :  { %11 = vsyncpa [#allocation6], 0 }
   0x2   :  { %12 = vsyncpa [#allocation4], 0 }
   0x3   :  { %13 = vsyncpa [#allocation10], 0  ;;  %s1316_s15 = smov [#allocation5]   ;;  %s1317_s17 = smov [#allocation2]  }
   0x4   :  { %s31_s16 = sshll.u32 %s1316_s15, 4  ;;  %s19_s18 = sshll.u32 %s1317_s17, 4  ;;  %s32_s16 = int_to_ptr.vmem [resolvable:$true] %s31_s16  ;;  %s1352_s18 = int_to_ptr.vmem [resolvable:$true] %s19_s18 }
   0x5   :  { %s1198_s21 = scalar_lea.hbm %s1576_s1, 512 }
   0x6   :  { %p1199_p0 = scmp.ne.s32.totalorder %s1576_s1, %s1198_s21  ;;  %p1202_p1 = scmp.lt.u32.totalorder %s1198_s21, %s1576_s1 }
   0x8   :  { %p1204_p2 = pnand %p1202_p1, %p1199_p0 }
   0xa   :  { %1207 = shalt.err (!%p1204_p2)
}
   0xb   :  { %s1208_s26 = scalar_lea.vmem %s32_s16, 512  ;;  %p1213_p4 = scmp.lt.s32.totalorder %s32_s16, %s32_s16 }
   0xc   :  { %p1209_p3 = scmp.ne.s32.totalorder %s32_s16, %s1208_s26  ;;  %p1214_p5 = scmp.lt.s32.totalorder %s1208_s26, %s1208_s26 }
   0xe   :  { %p1215_p6 = por %p1214_p5, %p1213_p4 }
  0x10   :  { %p1216_p7 = pnand %p1215_p6, %p1209_p3 }
  0x12   :  { %1219 = shalt.err (!%p1216_p7)
}
  0x13   :  { %s1318_s27 = smov 64   ;;  %s1319_s28 = smov 4  }
  0x14   :  { %37 = dma.hbm_to_vmem [thread:$0]  %s1576_s1, 512, %s32_s16, [#allocation6], %s1318_s27, %s1318_s27, %s1319_s28  }
  0x15   :  { %s1220_s7 = scalar_lea.hbm %s1575_s0, 512 }
  0x16   :  { %p1221_p8 = scmp.ne.s32.totalorder %s1575_s0, %s1220_s7  ;;  %p1224_p9 = scmp.lt.u32.totalorder %s1220_s7, %s1575_s0 }
  0x18   :  { %p1226_p10 = pnand %p1224_p9, %p1221_p8 }
  0x1a   :  { %1229 = shalt.err (!%p1226_p10)
}
  0x1b   :  { %s1230_s12 = scalar_lea.vmem %s1352_s18, 512  ;;  %p1235_p12 = scmp.lt.s32.totalorder %s1352_s18, %s1352_s18 }
  0x1c   :  { %p1231_p11 = scmp.ne.s32.totalorder %s1352_s18, %s1230_s12  ;;  %p1236_p13 = scmp.lt.s32.totalorder %s1230_s12, %s1230_s12 }
  0x1e   :  { %p1237_p0 = por %p1236_p13, %p1235_p12 }
  0x20   :  { %p1238_p1 = pnand %p1237_p0, %p1231_p11 }
  0x22   :  { %1241 = shalt.err (!%p1238_p1)
}
  0x23   :  { %25 = dma.hbm_to_vmem [thread:$0]  %s1575_s0, 512, %s1352_s18, [#allocation3], %s1318_s27, %s1318_s27, %s1319_s28  }
  0x24   :  { %s1320_s14 = smov [#allocation7]   ;;  %s1242_s19 = scalar_lea.hbm %s1577_s2, 512 }
  0x25   :  { %s43_s15 = sshll.u32 %s1320_s14, 4  ;;  %p1243_p2 = scmp.ne.s32.totalorder %s1577_s2, %s1242_s19  ;;  %s44_s15 = int_to_ptr.vmem [resolvable:$true] %s43_s15 }
  0x26   :  { %p1246_p3 = scmp.lt.u32.totalorder %s1242_s19, %s1577_s2 }
  0x28   :  { %p1248_p4 = pnand %p1246_p3, %p1243_p2 }
  0x2a   :  { %1251 = shalt.err (!%p1248_p4)
}
  0x2b   :  { %s1252_s24 = scalar_lea.vmem %s44_s15, 512  ;;  %p1257_p6 = scmp.lt.s32.totalorder %s44_s15, %s44_s15 }
  0x2c   :  { %p1253_p5 = scmp.ne.s32.totalorder %s44_s15, %s1252_s24  ;;  %p1258_p7 = scmp.lt.s32.totalorder %s1252_s24, %s1252_s24 }
  0x2e   :  { %p1259_p8 = por %p1258_p7, %p1257_p6 }
  0x30   :  { %p1260_p9 = pnand %p1259_p8, %p1253_p5 }
  0x32   :  { %1263 = shalt.err (!%p1260_p9)
}
  0x33   :  { %49 = dma.hbm_to_vmem [thread:$0]  %s1577_s2, 512, %s44_s15, [#allocation6], %s1318_s27, %s1318_s27, %s1319_s28  }
  0x34   :  { %1308 = dma.done.wait [#allocation3], 512  }
  0x35   :  { %1309 = vsyncadd [#allocation3], 4294966784 }
  0x36   :  { %1310 = dma.done.wait [#allocation6], 1024  }
  0x37   :  { %1311 = vsyncadd [#allocation6], 4294966272  ;;  %v1321_v0 = vmov 0.0   ;;  %vm1322_vm0 = vmmov 0   ;;  %vm93_vm1 = vcmask 261120   ;;  %vm462_vm2 = vcmask 64512  }
  0x38   :  { %1059 = vmatprep.subr.bf16.mxu0 %v1321_v0  ;;  %1065 = vmatprep.subr.bf16.mxu1 %v1321_v0  ;;  %v77_v1 = vld [vmem:[#allocation5] sm:$0xf]  ;;  %v78_v2 = vld [vmem:[#allocation5 + $0x4] sm:$0xf]  ;;  %v79_v7 = vld [vmem:[#allocation5 + $0x8] sm:$0xf] }
  0x39   :  { %1061 = vmatprep.mubr.msk.bf16.mxu0 %vm1322_vm0, %v1321_v0  ;;  %1067 = vmatprep.mubr.msk.bf16.mxu1 %vm1322_vm0, %v1321_v0  ;;  %v98_v3 = vsel %vm93_vm1, %v77_v1, 0  ;;  %v144_v4 = vsel %vm93_vm1, %v78_v2, 0  ;;  %v61_v5 = vld [vmem:[#allocation2] sm:$0xf]  ;;  %v62_v6 = vld [vmem:[#allocation2 + $0x4] sm:$0xf] }
  0x3a   :  { %1060 = vmatpush3.bf16.xpose.msra.mxu0 %v98_v3  ;;  %1066 = vmatpush3.bf16.xpose.msra.mxu1 %v144_v4  ;;  %v80_v8 = vld [vmem:[#allocation5 + $0xc] sm:$0xf]  ;;  %v69_v9 = vmul.bf16 1043676725, %v61_v5  ;;  %v70_v10 = vmul.bf16 1043676725, %v62_v6 }
  0x3b   :  { %1071 = vmatprep.subr.bf16.mxu0 %v1321_v0  ;;  %1077 = vmatprep.subr.bf16.mxu1 %v1321_v0  ;;  %v190_v11 = vsel %vm93_vm1, %v79_v7, 0  ;;  %v236_v12 = vsel %vm93_vm1, %v80_v8, 0  ;;  %v63_v13 = vld [vmem:[#allocation2 + $0x8] sm:$0xf]  ;;  %v64_v14 = vld [vmem:[#allocation2 + $0xc] sm:$0xf] }
  0x3c   :  { %v81_v15 = vld [vmem:[#allocation5 + $0x10] sm:$0xf]  ;;  %v82_v16 = vld [vmem:[#allocation5 + $0x14] sm:$0xf]  ;;  %v71_v17 = vmul.bf16 1043676725, %v63_v13 }
  0x3d   :  { %v72_v18 = vmul.bf16 1043676725, %v64_v14  ;;  %v282_v19 = vsel %vm93_vm1, %v81_v15, 0  ;;  %v328_v20 = vsel %vm93_vm1, %v82_v16, 0  ;;  %v65_v21 = vld [vmem:[#allocation2 + $0x10] sm:$0xf] }
  0x3e   :  { %v66_v22 = vld [vmem:[#allocation2 + $0x14] sm:$0xf]  ;;  %v83_v23 = vld [vmem:[#allocation5 + $0x18] sm:$0xf]  ;;  %v84_v24 = vld [vmem:[#allocation5 + $0x1c] sm:$0xf] }
  0x3f   :  { %v73_v25 = vmul.bf16 1043676725, %v65_v21  ;;  %v74_v26 = vmul.bf16 1043676725, %v66_v22  ;;  %v374_v27 = vsel %vm93_vm1, %v83_v23, 0  ;;  %v420_v28 = vsel %vm93_vm1, %v84_v24, 0 }
  0x40   :  { %v67_v29 = vld [vmem:[#allocation2 + $0x18] sm:$0xf]  ;;  %v68_v30 = vld [vmem:[#allocation2 + $0x1c] sm:$0xf]  ;;  %vm603_vm3 = vcmask 1043456   ;;  %vm583_vm4 = vcmask 60416  }
  0x41   :  { %1062 = vmatmul.mubr.msk.bf16.vlgmr.msra.gmra.mrb[0].mxu0 %vm93_vm1, %v69_v9  ;;  %1068 = vmatmul.mubr.msk.bf16.vlgmr.msra.gmra.mrb[0].mxu1 %vm93_vm1, %v70_v10  ;;  %v75_v31 = vmul.bf16 1043676725, %v67_v29  ;;  %v76_v32 = vmul.bf16 1043676725, %v68_v30  ;;  %s1323_s2 = smov [#allocation9]  }
  0x42   :  { %1072 = vmatpush3.bf16.xpose.msra.mxu0 %v190_v11  ;;  %1078 = vmatpush3.bf16.xpose.msra.mxu1 %v236_v12  ;;  %s994_s25 = sshll.u32 %s1323_s2, 4  ;;  %s995_s25 = int_to_ptr.vmem [resolvable:$true] %s994_s25 }
  0x43   :  { %1073 = vmatprep.mubr.msk.bf16.mxu0 %vm1322_vm0, %v1321_v0  ;;  %1079 = vmatprep.mubr.msk.bf16.mxu1 %vm1322_vm0, %v1321_v0  ;;  %s1264_s26 = scalar_lea.vmem %s995_s25, 512  ;;  %p1269_p11 = scmp.lt.s32.totalorder %s995_s25, %s995_s25 }
  0x44   :  { %1083 = vmatprep.subr.bf16.mxu0 %v1321_v0  ;;  %1089 = vmatprep.subr.bf16.mxu1 %v1321_v0  ;;  %p1265_p10 = scmp.ne.s32.totalorder %s995_s25, %s1264_s26  ;;  %p1270_p12 = scmp.lt.s32.totalorder %s1264_s26, %s1264_s26 }
  0x46   :  { %p1271_p13 = por %p1270_p12, %p1269_p11 }
  0x48   :  { %p1272_p0 = pnand %p1271_p13, %p1265_p10 }
  0x49   :  { %1074 = vmatmul.mubr.msk.bf16.vlgmr.msra.gmra.mrb[4].mxu0 %vm93_vm1, %v71_v17  ;;  %1080 = vmatmul.mubr.msk.bf16.vlgmr.msra.gmra.mrb[4].mxu1 %vm93_vm1, %v72_v18 }
  0x4a   :  { %1084 = vmatpush3.bf16.xpose.msra.mxu0 %v282_v19  ;;  %1090 = vmatpush3.bf16.xpose.msra.mxu1 %v328_v20 }
  0x4b   :  { %1085 = vmatprep.mubr.msk.bf16.mxu0 %vm1322_vm0, %v1321_v0  ;;  %1091 = vmatprep.mubr.msk.bf16.mxu1 %vm1322_vm0, %v1321_v0 }
  0x4c   :  { %1095 = vmatprep.subr.bf16.mxu0 %v1321_v0  ;;  %1101 = vmatprep.subr.bf16.mxu1 %v1321_v0 }
  0x51   :  { %1086 = vmatmul.mubr.msk.bf16.vlgmr.msra.gmra.mrb[8].mxu0 %vm93_vm1, %v73_v25  ;;  %1092 = vmatmul.mubr.msk.bf16.vlgmr.msra.gmra.mrb[8].mxu1 %vm93_vm1, %v74_v26 }
  0x52   :  { %1096 = vmatpush3.bf16.xpose.msra.mxu0 %v374_v27  ;;  %1102 = vmatpush3.bf16.xpose.msra.mxu1 %v420_v28 }
  0x53   :  { %1097 = vmatprep.mubr.msk.bf16.mxu0 %vm1322_vm0, %v1321_v0  ;;  %1103 = vmatprep.mubr.msk.bf16.mxu1 %vm1322_vm0, %v1321_v0 }
  0x54   :  { %1107 = vmatprep.subr.bf16.mxu0 %v1321_v0  ;;  %1113 = vmatprep.subr.bf16.mxu1 %v1321_v0 }
  0x59   :  { %1098 = vmatmul.mubr.msk.bf16.vlgmr.msra.gmra.mrb[12].mxu0 %vm93_vm1, %v75_v31  ;;  %1104 = vmatmul.mubr.msk.bf16.vlgmr.msra.gmra.mrb[12].mxu1 %vm93_vm1, %v76_v32 }
  0x5a   :  { %1109 = vmatprep.mubr.msk.bf16.mxu0 %vm1322_vm0, %v1321_v0  ;;  %1115 = vmatprep.mubr.msk.bf16.mxu1 %vm1322_vm0, %v1321_v0 }
 0x114   :  { %v134_v33 = vpop.f32.mrb[0].mxu0  ;;  %v180_v34 = vpop.f32.mrb[0].mxu1 }
 0x115   :  { %v1063_v35 = vpop.f32.mrb[1].mxu0  ;;  %v463_v36 = vsel %vm462_vm2, %v134_v33, -inf  ;;  %v1069_v37 = vpop.f32.mrb[1].mxu1  ;;  %v466_v42 = vsel %vm462_vm2, %v180_v34, -inf }
 0x116   :  { %464 = vmax.xlane.f32.xlu0 %v463_v36  ;;  %v137_v38 = vpop.f32.mrb[2].mxu0  ;;  %v183_v39 = vpop.f32.mrb[2].mxu1 }
 0x117   :  { %v1064_v40 = vpop.f32.mrb[3].mxu0  ;;  %v1070_v41 = vpop.f32.mrb[3].mxu1 }
 0x11a   :  { %467 = vmax.xlane.f32.xlu0 %v466_v42 }
 0x11c   :  { %v226_v43 = vpop.f32.mrb[4].mxu0  ;;  %v272_v44 = vpop.f32.mrb[4].mxu1 }
 0x11d   :  { %v1075_v45 = vpop.f32.mrb[5].mxu0  ;;  %v469_v46 = vsel %vm462_vm2, %v226_v43, -inf  ;;  %v1081_v47 = vpop.f32.mrb[5].mxu1  ;;  %v472_v52 = vsel %vm462_vm2, %v272_v44, -inf }
 0x11e   :  { %470 = vmax.xlane.f32.xlu1 %v469_v46  ;;  %v229_v48 = vpop.f32.mrb[6].mxu0  ;;  %v275_v49 = vpop.f32.mrb[6].mxu1 }
 0x11f   :  { %v1076_v50 = vpop.f32.mrb[7].mxu0  ;;  %v1082_v51 = vpop.f32.mrb[7].mxu1 }
 0x122   :  { %473 = vmax.xlane.f32.xlu1 %v472_v52 }
 0x124   :  { %v318_v53 = vpop.f32.mrb[8].mxu0  ;;  %v364_v54 = vpop.f32.mrb[8].mxu1 }
 0x125   :  { %v478_v55 = vsel %vm462_vm2, %v364_v54, -inf  ;;  %v475_v56 = vsel %vm462_vm2, %v318_v53, -inf  ;;  %v1087_v57 = vpop.f32.mrb[9].mxu0  ;;  %v1093_v58 = vpop.f32.mrb[9].mxu1 }
 0x126   :  { %479 = vmax.xlane.f32.xlu1 %v478_v55  ;;  %476 = vmax.xlane.f32.xlu0 %v475_v56  ;;  %v321_v59 = vpop.f32.mrb[10].mxu0  ;;  %v367_v60 = vpop.f32.mrb[10].mxu1 }
 0x127   :  { %v1088_v61 = vpop.f32.mrb[11].mxu0  ;;  %v1094_v62 = vpop.f32.mrb[11].mxu1 }
 0x12c   :  { %v410_v63 = vpop.f32.mrb[12].mxu0  ;;  %v456_v1 = vpop.f32.mrb[12].mxu1 }
 0x12d   :  { %v484_v2 = vsel %vm462_vm2, %v456_v1, -inf  ;;  %v481_v3 = vsel %vm462_vm2, %v410_v63, -inf  ;;  %v1099_v4 = vpop.f32.mrb[13].mxu0  ;;  %v1105_v5 = vpop.f32.mrb[13].mxu1 }
 0x12e   :  { %485 = vmax.xlane.f32.xlu1 %v484_v2  ;;  %482 = vmax.xlane.f32.xlu0 %v481_v3  ;;  %v413_v6 = vpop.f32.mrb[14].mxu0  ;;  %v459_v7 = vpop.f32.mrb[14].mxu1  ;;  %v85_v3 = vld [vmem:[#allocation7] sm:$0xf]  ;;  %v86_v5 = vld [vmem:[#allocation7 + $0x4] sm:$0xf] }
 0x12f   :  { %v1100_v8 = vpop.f32.mrb[15].mxu0  ;;  %v1106_v9 = vpop.f32.mrb[15].mxu1  ;;  %v605_v4 = vsel %vm603_vm3, %v85_v3, 0  ;;  %v651_v6 = vsel %vm603_vm3, %v86_v5, 0 }
 0x130   :  { %1108 = vmatpush3.bf16.msra.mxu0 %v605_v4  ;;  %1114 = vmatpush3.bf16.msra.mxu1 %v651_v6 }
 0x131   :  { %1119 = vmatprep.subr.bf16.mxu0 %v1321_v0  ;;  %1125 = vmatprep.subr.bf16.mxu1 %v1321_v0 }
 0x1a3   :  { %v465_v10 = vpop.xlane.xlu0 %464 }
 0x1a4   :  { %v487_v11 = vsub.f32 %v134_v33, %v465_v10 }
 0x1a6   :  { %v495_v12 = vpack.c.bf16 %v487_v11, %v487_v11 }
 0x1a7   :  { %v468_v13 = vpop.xlane.xlu0 %467 }
 0x1a8   :  { %v504_v14 = vmul.bf16 1069105081, %v495_v12  ;;  %v488_v15 = vsub.f32 %v180_v34, %v468_v13 }
 0x1aa   :  { %1166 = vpow.bf16 %v504_v14  ;;  %v496_v16 = vpack.c.bf16 %v488_v15, %v488_v15 }
 0x1ab   :  { %v471_v17 = vpop.xlane.xlu1 %470 }
 0x1ac   :  { %v507_v18 = vmul.bf16 1069105081, %v496_v16  ;;  %v489_v19 = vsub.f32 %v226_v43, %v471_v17 }
 0x1ae   :  { %1168 = vpow.bf16 %v507_v18  ;;  %v497_v20 = vpack.c.bf16 %v489_v19, %v489_v19 }
 0x1af   :  { %v474_v21 = vpop.xlane.xlu1 %473 }
 0x1b0   :  { %v510_v22 = vmul.bf16 1069105081, %v497_v20  ;;  %v490_v23 = vsub.f32 %v272_v44, %v474_v21  ;;  %v87_v20 = vld [vmem:[#allocation7 + $0x8] sm:$0xf] }
 0x1b2   :  { %1170 = vpow.bf16 %v510_v22  ;;  %v498_v24 = vpack.c.bf16 %v490_v23, %v490_v23  ;;  %v697_v23 = vsel %vm603_vm3, %v87_v20, 0 }
 0x1b3   :  { %v480_v25 = vpop.xlane.xlu1 %479  ;;  %v477_v26 = vpop.xlane.xlu0 %476 }
 0x1b4   :  { %v513_v27 = vmul.bf16 1069105081, %v498_v24  ;;  %v492_v28 = vsub.f32 %v364_v54, %v480_v25  ;;  %v491_v29 = vsub.f32 %v318_v53, %v477_v26  ;;  %v88_v26 = vld [vmem:[#allocation7 + $0xc] sm:$0xf] }
 0x1b5   :  { %v1458_v30 = vpop.eup %1166 }
 0x1b6   :  { %1172 = vpow.bf16 %v513_v27  ;;  %v500_v31 = vpack.c.bf16 %v492_v28, %v492_v28  ;;  %v499_v32 = vpack.c.bf16 %v491_v29, %v491_v29  ;;  %v527_v33 = vunpack.c.l.bf16 %v1458_v30 }
 0x1b8   :  { %v519_v34 = vmul.bf16 1069105081, %v500_v31  ;;  %v516_v35 = vmul.bf16 1069105081, %v499_v32  ;;  %v535_v36 = vsel %vm462_vm2, %v527_v33, 0.0  ;;  %v743_v31 = vsel %vm603_vm3, %v88_v26, 0 }
 0x1b9   :  { %v1462_v37 = vpop.eup %1168  ;;  %536 = vadd.xlane.f32.xlu0 %v535_v36 }
 0x1ba   :  { %1174 = vpow.bf16 %v519_v34  ;;  %v528_v38 = vunpack.c.l.bf16 %v1462_v37  ;;  %v89_v34 = vld [vmem:[#allocation7 + $0x10] sm:$0xf] }
 0x1bb   :  { %1176 = vpow.bf16 %v516_v35  ;;  %v486_v39 = vpop.xlane.xlu1 %485  ;;  %v483_v40 = vpop.xlane.xlu0 %482 }
 0x1bc   :  { %v494_v41 = vsub.f32 %v456_v1, %v486_v39  ;;  %v493_v42 = vsub.f32 %v410_v63, %v483_v40  ;;  %v538_v43 = vsel %vm462_vm2, %v528_v38, 0.0  ;;  %v789_v39 = vsel %vm603_vm3, %v89_v34, 0 }
 0x1bd   :  { %v1466_v44 = vpop.eup %1170  ;;  %539 = vadd.xlane.f32.xlu1 %v538_v43 }
 0x1be   :  { %v502_v45 = vpack.c.bf16 %v494_v41, %v494_v41  ;;  %v501_v46 = vpack.c.bf16 %v493_v42, %v493_v42  ;;  %v529_v47 = vunpack.c.l.bf16 %v1466_v44  ;;  %v90_v42 = vld [vmem:[#allocation7 + $0x14] sm:$0xf] }
 0x1bf   :  { %v835_v43 = vsel %vm603_vm3, %v90_v42, 0 }
 0x1c0   :  { %v525_v48 = vmul.bf16 1069105081, %v502_v45  ;;  %v522_v49 = vmul.bf16 1069105081, %v501_v46  ;;  %v541_v50 = vsel %vm462_vm2, %v529_v47, 0.0 }
 0x1c1   :  { %v1470_v51 = vpop.eup %1172  ;;  %542 = vadd.xlane.f32.xlu0 %v541_v50 }
 0x1c2   :  { %1178 = vpow.bf16 %v525_v48  ;;  %v530_v52 = vunpack.c.l.bf16 %v1470_v51  ;;  %v91_v48 = vld [vmem:[#allocation7 + $0x18] sm:$0xf] }
 0x1c3   :  { %1180 = vpow.bf16 %v522_v49 }
 0x1c4   :  { %v544_v53 = vsel %vm462_vm2, %v530_v52, 0.0  ;;  %v881_v52 = vsel %vm603_vm3, %v91_v48, 0 }
 0x1c5   :  { %v1474_v54 = vpop.eup %1174  ;;  %545 = vadd.xlane.f32.xlu1 %v544_v53  ;;  %v92_v53 = vld [vmem:[#allocation7 + $0x1c] sm:$0xf] }
 0x1c6   :  { %v1476_v55 = vpop.eup %1176  ;;  %v532_v56 = vunpack.c.l.bf16 %v1474_v54 }
 0x1c7   :  { %v531_v57 = vunpack.c.l.bf16 %v1476_v55 }
 0x1c8   :  { %v550_v58 = vsel %vm462_vm2, %v532_v56, 0.0 }
 0x1c9   :  { %551 = vadd.xlane.f32.xlu1 %v550_v58  ;;  %v547_v59 = vsel %vm462_vm2, %v531_v57, 0.0 }
 0x1ca   :  { %548 = vadd.xlane.f32.xlu0 %v547_v59 }
 0x1cd   :  { %v1482_v60 = vpop.eup %1178 }
 0x1ce   :  { %v1484_v61 = vpop.eup %1180  ;;  %v534_v62 = vunpack.c.l.bf16 %v1482_v60 }
 0x1cf   :  { %v533_v63 = vunpack.c.l.bf16 %v1484_v61 }
 0x1d0   :  { %v556_v1 = vsel %vm462_vm2, %v534_v62, 0.0 }
 0x1d1   :  { %557 = vadd.xlane.f32.xlu1 %v556_v1  ;;  %v553_v2 = vsel %vm462_vm2, %v533_v63, 0.0 }
 0x1d2   :  { %554 = vadd.xlane.f32.xlu0 %v553_v2 }
 0x246   :  { %v537_v7 = vpop.xlane.xlu0 %536 }
 0x247   :  { %1182 = vrcp.f32 %v537_v7 }
 0x24a   :  { %v540_v8 = vpop.xlane.xlu1 %539 }
 0x24b   :  { %1184 = vrcp.f32 %v540_v8 }
 0x24e   :  { %v543_v9 = vpop.xlane.xlu0 %542 }
 0x24f   :  { %1186 = vrcp.f32 %v543_v9 }
 0x251   :  { %v1183_v10 = vpop.eup %1182 }
 0x252   :  { %v567_v11 = vpack.c.bf16 %v1183_v10, %v1183_v10  ;;  %v546_v12 = vpop.xlane.xlu1 %545 }
 0x253   :  { %1188 = vrcp.f32 %v546_v12 }
 0x254   :  { %v575_v13 = vmul.bf16 %v1458_v30, %v567_v11 }
 0x255   :  { %v1185_v14 = vpop.eup %1184 }
 0x256   :  { %584 = vst.msk [vmem:[#allocation9] sm:$0xf] %vm583_vm4, %v575_v13  ;;  %v568_v15 = vpack.c.bf16 %v1185_v14, %v1185_v14  ;;  %v552_v16 = vpop.xlane.xlu1 %551 }
 0x257   :  { %1190 = vrcp.f32 %v552_v16  ;;  %v549_v17 = vpop.xlane.xlu0 %548 }
 0x258   :  { %v576_v18 = vmul.bf16 %v1462_v37, %v568_v15  ;;  %1192 = vrcp.f32 %v549_v17 }
 0x259   :  { %v1187_v19 = vpop.eup %1186 }
 0x25a   :  { %585 = vst.msk [vmem:[#allocation9 + $0x4] sm:$0xf] %vm583_vm4, %v576_v18  ;;  %v569_v21 = vpack.c.bf16 %v1187_v19, %v1187_v19 }
 0x25c   :  { %v577_v22 = vmul.bf16 %v1466_v44, %v569_v21 }
 0x25d   :  { %v1189_v24 = vpop.eup %1188  ;;  %v592_v25 = vld [vmem:[#allocation9] sm:$0xf] }
 0x25e   :  { %586 = vst.msk [vmem:[#allocation9 + $0x8] sm:$0xf] %vm583_vm4, %v577_v22  ;;  %v570_v27 = vpack.c.bf16 %v1189_v24, %v1189_v24  ;;  %v558_v28 = vpop.xlane.xlu1 %557  ;;  %1110 = vmatmul.mubr.msk.bf16.vlgmr.msra.gmra.mrb[16].mxu0 %vm462_vm2, %v592_v25 }
 0x25f   :  { %1194 = vrcp.f32 %v558_v28  ;;  %v555_v29 = vpop.xlane.xlu0 %554  ;;  %1120 = vmatpush3.bf16.msra.mxu0 %v697_v23  ;;  %1121 = vmatprep.mubr.msk.bf16.mxu0 %vm1322_vm0, %v1321_v0 }
 0x260   :  { %v578_v30 = vmul.bf16 %v1470_v51, %v570_v27  ;;  %1196 = vrcp.f32 %v555_v29  ;;  %1131 = vmatprep.subr.bf16.mxu0 %v1321_v0 }
 0x261   :  { %v1191_v32 = vpop.eup %1190  ;;  %v593_v33 = vld [vmem:[#allocation9 + $0x4] sm:$0xf] }
 0x262   :  { %v1193_v35 = vpop.eup %1192  ;;  %587 = vst.msk [vmem:[#allocation9 + $0xc] sm:$0xf] %vm583_vm4, %v578_v30  ;;  %v572_v36 = vpack.c.bf16 %v1191_v32, %v1191_v32  ;;  %1116 = vmatmul.mubr.msk.bf16.vlgmr.msra.gmra.mrb[16].mxu1 %vm462_vm2, %v593_v33 }
 0x263   :  { %v571_v37 = vpack.c.bf16 %v1193_v35, %v1193_v35  ;;  %1126 = vmatpush3.bf16.msra.mxu1 %v743_v31  ;;  %1127 = vmatprep.mubr.msk.bf16.mxu1 %vm1322_vm0, %v1321_v0 }
 0x264   :  { %v580_v38 = vmul.bf16 %v1474_v54, %v572_v36  ;;  %1137 = vmatprep.subr.bf16.mxu1 %v1321_v0 }
 0x265   :  { %v579_v40 = vmul.bf16 %v1476_v55, %v571_v37  ;;  %v594_v41 = vld [vmem:[#allocation9 + $0x8] sm:$0xf]  ;;  %v927_v55 = vsel %vm603_vm3, %v92_v53, 0 }
 0x266   :  { %589 = vst.msk [vmem:[#allocation9 + $0x14] sm:$0xf] %vm583_vm4, %v580_v38  ;;  %1122 = vmatmul.mubr.msk.bf16.vlgmr.msra.gmra.mrb[20].mxu0 %vm462_vm2, %v594_v41 }
 0x267   :  { %588 = vst.msk [vmem:[#allocation9 + $0x10] sm:$0xf] %vm583_vm4, %v579_v40  ;;  %1132 = vmatpush3.bf16.msra.mxu0 %v789_v39  ;;  %1133 = vmatprep.mubr.msk.bf16.mxu0 %vm1322_vm0, %v1321_v0 }
 0x268   :  { %1143 = vmatprep.subr.bf16.mxu0 %v1321_v0 }
 0x269   :  { %v1195_v44 = vpop.eup %1194  ;;  %v595_v45 = vld [vmem:[#allocation9 + $0xc] sm:$0xf] }
 0x26a   :  { %v1197_v46 = vpop.eup %1196  ;;  %v574_v47 = vpack.c.bf16 %v1195_v44, %v1195_v44  ;;  %1128 = vmatmul.mubr.msk.bf16.vlgmr.msra.gmra.mrb[20].mxu1 %vm462_vm2, %v595_v45 }
 0x26b   :  { %v573_v49 = vpack.c.bf16 %v1197_v46, %v1197_v46  ;;  %1138 = vmatpush3.bf16.msra.mxu1 %v835_v43  ;;  %1139 = vmatprep.mubr.msk.bf16.mxu1 %vm1322_vm0, %v1321_v0 }
 0x26c   :  { %v582_v50 = vmul.bf16 %v1482_v60, %v574_v47  ;;  %1149 = vmatprep.subr.bf16.mxu1 %v1321_v0 }
 0x26d   :  { %v581_v51 = vmul.bf16 %v1484_v61, %v573_v49  ;;  %v597_v56 = vld [vmem:[#allocation9 + $0x14] sm:$0xf] }
 0x26e   :  { %591 = vst.msk [vmem:[#allocation9 + $0x1c] sm:$0xf] %vm583_vm4, %v582_v50  ;;  %v596_v54 = vld [vmem:[#allocation9 + $0x10] sm:$0xf] }
 0x26f   :  { %590 = vst.msk [vmem:[#allocation9 + $0x18] sm:$0xf] %vm583_vm4, %v581_v51  ;;  %1134 = vmatmul.mubr.msk.bf16.vlgmr.msra.gmra.mrb[24].mxu0 %vm462_vm2, %v596_v54 }
 0x270   :  { %1144 = vmatpush3.bf16.msra.mxu0 %v881_v52  ;;  %1145 = vmatprep.mubr.msk.bf16.mxu0 %vm1322_vm0, %v1321_v0 }
 0x272   :  { %1140 = vmatmul.mubr.msk.bf16.vlgmr.msra.gmra.mrb[24].mxu1 %vm462_vm2, %v597_v56 }
 0x273   :  { %1150 = vmatpush3.bf16.msra.mxu1 %v927_v55  ;;  %1151 = vmatprep.mubr.msk.bf16.mxu1 %vm1322_vm0, %v1321_v0 }
 0x275   :  { %v599_v58 = vld [vmem:[#allocation9 + $0x1c] sm:$0xf] }
 0x276   :  { %v598_v57 = vld [vmem:[#allocation9 + $0x18] sm:$0xf] }
 0x277   :  { %1146 = vmatmul.mubr.msk.bf16.vlgmr.msra.gmra.mrb[28].mxu0 %vm462_vm2, %v598_v57 }
 0x27a   :  { %1152 = vmatmul.mubr.msk.bf16.vlgmr.msra.gmra.mrb[28].mxu1 %vm462_vm2, %v599_v58 }
 0x27b   :  { %1275 = shalt.err (!%p1272_p0)
}
 0x27c   :  { %s1276_s5 = scalar_lea.hbm %s1579_s4, 512 }
 0x27d   :  { %p1277_p1 = scmp.ne.s32.totalorder %s1579_s4, %s1276_s5  ;;  %p1280_p2 = scmp.lt.u32.totalorder %s1276_s5, %s1579_s4 }
 0x27f   :  { %p1282_p3 = pnand %p1280_p2, %p1277_p1 }
 0x281   :  { %1285 = shalt.err (!%p1282_p3)
}
 0x282   :  { %1000 = dma.vmem_to_hbm [thread:$0]  %s995_s25, 512, %s1579_s4, [#allocation10], %s1318_s27, %s1318_s27, %s1319_s28  }
 0x283   :  { %s1324_s4 = smov [#allocation8]  }
 0x284   :  { %s982_s27 = sshll.u32 %s1324_s4, 4  ;;  %s983_s27 = int_to_ptr.vmem [resolvable:$true] %s982_s27 }
 0x285   :  { %s1286_s28 = scalar_lea.vmem %s983_s27, 1024  ;;  %p1291_p5 = scmp.lt.s32.totalorder %s983_s27, %s983_s27 }
 0x286   :  { %p1287_p4 = scmp.ne.s32.totalorder %s983_s27, %s1286_s28  ;;  %p1292_p6 = scmp.lt.s32.totalorder %s1286_s28, %s1286_s28 }
 0x288   :  { %p1293_p7 = por %p1292_p6, %p1291_p5 }
 0x28a   :  { %p1294_p8 = pnand %p1293_p7, %p1287_p4 }
 0x331   :  { %v641_v0 = vpop.f32.mrb[16].mxu0 }
 0x332   :  { %969 = vst.msk [vmem:[#allocation8] sm:$0xff] %vm93_vm1, %v641_v0  ;;  %v1111_v59 = vpop.f32.mrb[17].mxu0 }
 0x333   :  { %v644_v60 = vpop.f32.mrb[18].mxu0 }
 0x334   :  { %v1112_v61 = vpop.f32.mrb[19].mxu0 }
 0x335   :  { %v687_v62 = vpop.f32.mrb[16].mxu1 }
 0x336   :  { %970 = vst.msk [vmem:[#allocation8 + $0x8] sm:$0xff] %vm93_vm1, %v687_v62  ;;  %v1117_v63 = vpop.f32.mrb[17].mxu1 }
 0x337   :  { %v690_v1 = vpop.f32.mrb[18].mxu1 }
 0x338   :  { %v1118_v2 = vpop.f32.mrb[19].mxu1 }
 0x339   :  { %v733_v3 = vpop.f32.mrb[20].mxu0 }
 0x33a   :  { %971 = vst.msk [vmem:[#allocation8 + $0x10] sm:$0xff] %vm93_vm1, %v733_v3  ;;  %v1123_v4 = vpop.f32.mrb[21].mxu0 }
 0x33b   :  { %v736_v5 = vpop.f32.mrb[22].mxu0 }
 0x33c   :  { %v1124_v6 = vpop.f32.mrb[23].mxu0 }
 0x33d   :  { %v779_v7 = vpop.f32.mrb[20].mxu1 }
 0x33e   :  { %972 = vst.msk [vmem:[#allocation8 + $0x18] sm:$0xff] %vm93_vm1, %v779_v7  ;;  %v1129_v8 = vpop.f32.mrb[21].mxu1 }
 0x33f   :  { %v782_v9 = vpop.f32.mrb[22].mxu1 }
 0x340   :  { %v1130_v10 = vpop.f32.mrb[23].mxu1 }
 0x342   :  { %v825_v11 = vpop.f32.mrb[24].mxu0 }
 0x343   :  { %973 = vst.msk [vmem:[#allocation8 + $0x20] sm:$0xff] %vm93_vm1, %v825_v11  ;;  %v1135_v12 = vpop.f32.mrb[25].mxu0 }
 0x344   :  { %v828_v13 = vpop.f32.mrb[26].mxu0 }
 0x345   :  { %v1136_v14 = vpop.f32.mrb[27].mxu0  ;;  %v871_v15 = vpop.f32.mrb[24].mxu1 }
 0x346   :  { %974 = vst.msk [vmem:[#allocation8 + $0x28] sm:$0xff] %vm93_vm1, %v871_v15  ;;  %v1141_v16 = vpop.f32.mrb[25].mxu1 }
 0x347   :  { %v874_v17 = vpop.f32.mrb[26].mxu1 }
 0x348   :  { %v1142_v18 = vpop.f32.mrb[27].mxu1 }
 0x34a   :  { %v917_v19 = vpop.f32.mrb[28].mxu0 }
 0x34b   :  { %975 = vst.msk [vmem:[#allocation8 + $0x30] sm:$0xff] %vm93_vm1, %v917_v19  ;;  %v1147_v20 = vpop.f32.mrb[29].mxu0 }
 0x34c   :  { %v920_v21 = vpop.f32.mrb[30].mxu0 }
 0x34d   :  { %v1148_v22 = vpop.f32.mrb[31].mxu0  ;;  %v963_v23 = vpop.f32.mrb[28].mxu1 }
 0x34e   :  { %976 = vst.msk [vmem:[#allocation8 + $0x38] sm:$0xff] %vm93_vm1, %v963_v23  ;;  %v1153_v24 = vpop.f32.mrb[29].mxu1 }
 0x34f   :  { %v966_v25 = vpop.f32.mrb[30].mxu1 }
 0x350   :  { %1297 = shalt.err (!%p1294_p8)
}
 0x351   :  { %s1298_s13 = scalar_lea.hbm %s1578_s3, 1024 }
 0x352   :  { %p1299_p9 = scmp.ne.s32.totalorder %s1578_s3, %s1298_s13  ;;  %p1302_p10 = scmp.lt.u32.totalorder %s1298_s13, %s1578_s3 }
 0x354   :  { %p1304_p11 = pnand %p1302_p10, %p1299_p9 }
 0x356   :  { %1307 = shalt.err (!%p1304_p11)
}
 0x357   :  { %s1325_s19 = smov 128   ;;  %s1326_s20 = smov 8   ;;  %v1154_v26 = vpop.f32.mrb[31].mxu1 }
 0x358   :  { %988 = dma.vmem_to_hbm [thread:$0]  %s983_s27, 1024, %s1578_s3, [#allocation4], %s1325_s19, %s1325_s19, %s1326_s20  }
 0x359   :  { %1312 = dma.done.wait [#allocation4], 1024  }
 0x35a   :  { %1313 = vsyncadd [#allocation4], 4294966272 }
 0x35b   :  { %1314 = dma.done.wait [#allocation10], 512  }
 0x35c   :  { %1315 = vsyncadd [#allocation10], 4294966784 }
 0x35d   :  { %1007 = vsyncpa [#allocation3], 1 }
 0x35e   :  { %1008 = vsyncpa [#allocation6], 1 }
 0x35f   :  { %1009 = vsyncpa [#allocation4], 1 }
 0x360   :  { %1010 = vsyncpa [#allocation10], 1 }

</bundles_post_ra>
